<compile_context>
chip_gen: v5e
topology: v5e:2x2
jax: 0.10.0
libtpu: 0.0.40
codegen_flags: <defaults>
</compile_context>

<pallas_src>
import jax
import jax.numpy as jnp
from jax.experimental import pallas as pl
from jax.experimental.pallas import tpu as pltpu

NUM_PARTICLES = 20
IN_FEATURES = NUM_PARTICLES * (NUM_PARTICLES - 1) // 2  # 190
HIDDEN = 40
OUT_FEATURES = 1


def _round_up(n, m):
    return ((n + m - 1) // m) * m


def _mlp_kernel(x_ref, w1_ref, b1_ref, w2_ref, b2_ref, w3_ref, b3_ref, o_ref):
    # fc1 + ReLU  (bf16 operands, f32 accumulation on the MXU)
    h1 = jnp.dot(x_ref[...], w1_ref[...], preferred_element_type=jnp.float32)
    h1 = jnp.maximum(h1 + b1_ref[...], 0.0)
    # fc2 + ReLU
    h2 = jnp.dot(h1.astype(jnp.bfloat16), w2_ref[...],
                 preferred_element_type=jnp.float32)
    h2 = jnp.maximum(h2 + b2_ref[...], 0.0)
    # fc3 (no activation)
    y = jnp.dot(h2.astype(jnp.bfloat16), w3_ref[...],
                preferred_element_type=jnp.float32)
    o_ref[...] = (y + b3_ref[...]).astype(o_ref.dtype)


def physics_informed_net_forward(x, params, *, block_batch=2048):
    """x: [B, 190] float32.  params: dict of (w1,b1,w2,b2,w3,b3) with weights
    stored as [in, out] (transposed vs torch's [out, in])."""
    b = x.shape[0]
    # Batch tile: multiple of 16 (bf16 sublane packing), capped at block_batch.
    tb = min(block_batch, _round_up(b, 16))
    b_pad = _round_up(b, tb)
    if b_pad != b:
        x = jnp.pad(x, ((0, b_pad - b), (0, 0)))

    # HBM-bound on the x stream -> halve bytes with bf16; f32 acc keeps accuracy.
    x_bf = x.astype(jnp.bfloat16)
    w1 = params["w1"].astype(jnp.bfloat16)
    w2 = params["w2"].astype(jnp.bfloat16)
    w3 = params["w3"].astype(jnp.bfloat16)
    b1, b2, b3 = params["b1"], params["b2"], params["b3"]

    grid = (b_pad // tb,)
    # Constant index map -> parameters DMA'd once, stay resident in VMEM.
    const = lambda i: (0, 0)
    in_specs = [
        pl.BlockSpec((tb, IN_FEATURES), lambda i: (i, 0)),     # x tile (streamed)
        pl.BlockSpec((IN_FEATURES, HIDDEN), const),            # w1
        pl.BlockSpec((1, HIDDEN), const),                      # b1
        pl.BlockSpec((HIDDEN, HIDDEN), const),                 # w2
        pl.BlockSpec((1, HIDDEN), const),                      # b2
        pl.BlockSpec((HIDDEN, OUT_FEATURES), const),           # w3
        pl.BlockSpec((1, OUT_FEATURES), const),                # b3
    ]
    out_spec = pl.BlockSpec((tb, OUT_FEATURES), lambda i: (i, 0))

    n_wparams = IN_FEATURES * HIDDEN + HIDDEN * HIDDEN + HIDDEN * OUT_FEATURES
    flops = 2 * b_pad * n_wparams
    bytes_accessed = (
        b_pad * IN_FEATURES * 2            # x stream (bf16)
        + b_pad * OUT_FEATURES * 4         # output (f32)
        + n_wparams * 2                    # bf16 weights (loaded once)
        + (2 * HIDDEN + OUT_FEATURES) * 4  # f32 biases
    )

    out = pl.pallas_call(
        _mlp_kernel,
        out_shape=jax.ShapeDtypeStruct((b_pad, OUT_FEATURES), jnp.float32),
        grid=grid,
        in_specs=in_specs,
        out_specs=out_spec,
        compiler_params=pltpu.CompilerParams(
            dimension_semantics=("parallel",),  # megacore on v7x; harmless on v5e/v6e
            vmem_limit_bytes=32 * 1024 * 1024,
        ),
        cost_estimate=pl.CostEstimate(
            flops=flops, transcendentals=0, bytes_accessed=bytes_accessed),
    )(x_bf, w1, b1, w2, b2, w3, b3)

    return out[:b]


def init_params(key):
    """Deterministic init mirroring PyTorch nn.Linear default (uniform +-1/sqrt(fan_in)).
    Weights stored as [in, out]."""
    ks = jax.random.split(key, 6)

    def uni(k, shape, fan_in):
        bound = 1.0 / jnp.sqrt(jnp.float32(fan_in))
        return jax.random.uniform(k, shape, jnp.float32, -bound, bound)

    return {
        "w1": uni(ks[0], (IN_FEATURES, HIDDEN), IN_FEATURES),
        "b1": uni(ks[1], (1, HIDDEN), IN_FEATURES),
        "w2": uni(ks[2], (HIDDEN, HIDDEN), HIDDEN),
        "b2": uni(ks[3], (1, HIDDEN), HIDDEN),
        "w3": uni(ks[4], (HIDDEN, OUT_FEATURES), HIDDEN),
        "b3": uni(ks[5], (1, OUT_FEATURES), HIDDEN),
    }


def _reference_forward(x, p):
    h1 = jnp.maximum(x @ p["w1"] + p["b1"], 0.0)
    h2 = jnp.maximum(h1 @ p["w2"] + p["b2"], 0.0)
    return h2 @ p["w3"] + p["b3"]


if __name__ == "__main__":
    key = jax.random.PRNGKey(0)
    k_param, k_x = jax.random.split(key)

    params = init_params(k_param)
    batch = 8
    x = jax.random.normal(k_x, (batch, IN_FEATURES), jnp.float32)

    out = physics_informed_net_forward(x, params)
    out = jax.block_until_ready(out)

    ref = _reference_forward(x, params)  # full-f32 reference
    assert out.shape == (batch, OUT_FEATURES)
    # bf16 inputs/weights with f32 accumulation -> loose tolerance vs f32 reference.
    assert jnp.allclose(out, ref, atol=5e-2, rtol=5e-2)

    print("KERNEL_OK")
</pallas_src>

<mosaic_0001>
module attributes {stable_mosaic.version = 11 : i64} {
  func.func @_mlp_kernel(%arg0: i32, %arg1: memref<16x190xbf16, #tpu.memory_space<vmem>>, %arg2: memref<190x40xbf16, #tpu.memory_space<vmem>>, %arg3: memref<1x40xf32, #tpu.memory_space<vmem>>, %arg4: memref<40x40xbf16, #tpu.memory_space<vmem>>, %arg5: memref<1x40xf32, #tpu.memory_space<vmem>>, %arg6: memref<40x1xbf16, #tpu.memory_space<vmem>>, %arg7: memref<1x1xf32, #tpu.memory_space<vmem>>, %arg8: memref<16x1xf32, #tpu.memory_space<vmem>>) attributes {dimension_semantics = [#tpu.dimension_semantics<parallel>], iteration_bounds = array<i64: 1>, scalar_prefetch = 0 : i64, scratch_operands = 0 : i64, tpu.core_type = #tpu.core_type<tc>, window_params = [{transform_indices = @transform_0, window_bounds = array<i64: 16, 190>}, {pipeline_mode = #tpu.pipeline_mode<synchronous>, transform_indices = @transform_1, window_bounds = array<i64: 190, 40>}, {pipeline_mode = #tpu.pipeline_mode<synchronous>, transform_indices = @transform_2, window_bounds = array<i64: 1, 40>}, {pipeline_mode = #tpu.pipeline_mode<synchronous>, transform_indices = @transform_3, window_bounds = array<i64: 40, 40>}, {pipeline_mode = #tpu.pipeline_mode<synchronous>, transform_indices = @transform_4, window_bounds = array<i64: 1, 40>}, {pipeline_mode = #tpu.pipeline_mode<synchronous>, transform_indices = @transform_5, window_bounds = array<i64: 40, 1>}, {pipeline_mode = #tpu.pipeline_mode<synchronous>, transform_indices = @transform_6, window_bounds = array<i64: 1, 1>}, {transform_indices = @transform_7, window_bounds = array<i64: 16, 1>}]} {
    %c0 = arith.constant 0 : index
    %c0_0 = arith.constant 0 : index
    %0 = vector.load %arg1[%c0, %c0_0] : memref<16x190xbf16, #tpu.memory_space<vmem>>, vector<16x190xbf16>
    %c0_1 = arith.constant 0 : index
    %c0_2 = arith.constant 0 : index
    %1 = vector.load %arg2[%c0_1, %c0_2] : memref<190x40xbf16, #tpu.memory_space<vmem>>, vector<190x40xbf16>
    %cst = arith.constant dense<0.000000e+00> : vector<16x40xf32>
    %2 = tpu.matmul %0, %1, %cst {dimension_numbers = #tpu.dot_dimension_numbers<[1], [0], [0], [1], [0, 0, 1, 1], [], []>} : vector<16x190xbf16>, vector<190x40xbf16>, vector<16x40xf32> -> vector<16x40xf32>
    %c0_3 = arith.constant 0 : index
    %c0_4 = arith.constant 0 : index
    %3 = vector.load %arg3[%c0_3, %c0_4] : memref<1x40xf32, #tpu.memory_space<vmem>>, vector<1x40xf32>
    %4 = vector.broadcast %3 : vector<1x40xf32> to vector<16x40xf32>
    %5 = arith.addf %2, %4 : vector<16x40xf32>
    %cst_5 = arith.constant 0.000000e+00 : f32
    %6 = vector.broadcast %cst_5 : f32 to vector<16x40xf32>
    %7 = arith.maximumf %5, %6 : vector<16x40xf32>
    %8 = arith.truncf %7 : vector<16x40xf32> to vector<16x40xbf16>
    %c0_6 = arith.constant 0 : index
    %c0_7 = arith.constant 0 : index
    %9 = vector.load %arg4[%c0_6, %c0_7] : memref<40x40xbf16, #tpu.memory_space<vmem>>, vector<40x40xbf16>
    %cst_8 = arith.constant dense<0.000000e+00> : vector<16x40xf32>
    %10 = tpu.matmul %8, %9, %cst_8 {dimension_numbers = #tpu.dot_dimension_numbers<[1], [0], [0], [1], [0, 0, 1, 1], [], []>} : vector<16x40xbf16>, vector<40x40xbf16>, vector<16x40xf32> -> vector<16x40xf32>
    %c0_9 = arith.constant 0 : index
    %c0_10 = arith.constant 0 : index
    %11 = vector.load %arg5[%c0_9, %c0_10] : memref<1x40xf32, #tpu.memory_space<vmem>>, vector<1x40xf32>
    %12 = vector.broadcast %11 : vector<1x40xf32> to vector<16x40xf32>
    %13 = arith.addf %10, %12 : vector<16x40xf32>
    %cst_11 = arith.constant 0.000000e+00 : f32
    %14 = vector.broadcast %cst_11 : f32 to vector<16x40xf32>
    %15 = arith.maximumf %13, %14 : vector<16x40xf32>
    %16 = arith.truncf %15 : vector<16x40xf32> to vector<16x40xbf16>
    %c0_12 = arith.constant 0 : index
    %c0_13 = arith.constant 0 : index
    %17 = vector.load %arg6[%c0_12, %c0_13] : memref<40x1xbf16, #tpu.memory_space<vmem>>, vector<40x1xbf16>
    %cst_14 = arith.constant dense<0.000000e+00> : vector<16x1xf32>
    %18 = tpu.matmul %16, %17, %cst_14 {dimension_numbers = #tpu.dot_dimension_numbers<[1], [0], [0], [1], [0, 0, 1, 1], [], []>} : vector<16x40xbf16>, vector<40x1xbf16>, vector<16x1xf32> -> vector<16x1xf32>
    %c0_15 = arith.constant 0 : index
    %c0_16 = arith.constant 0 : index
    %19 = vector.load %arg7[%c0_15, %c0_16] : memref<1x1xf32, #tpu.memory_space<vmem>>, vector<1x1xf32>
    %20 = vector.broadcast %19 : vector<1x1xf32> to vector<16x1xf32>
    %21 = arith.addf %18, %20 : vector<16x1xf32>
    %c0_17 = arith.constant 0 : index
    %c0_18 = arith.constant 0 : index
    %22 = vector.load %arg8[%c0_17, %c0_18] : memref<16x1xf32, #tpu.memory_space<vmem>>, vector<16x1xf32>
    tpu.vector_store %arg8[%c0_17, %c0_18], %21 {strides = array<i32>} : memref<16x1xf32, #tpu.memory_space<vmem>>, vector<16x1xf32>,
    return
  }
  func.func @transform_0(%arg0: i32) -> (i32, i32) {
    %c0_i32 = arith.constant 0 : i32
    %c0_i32_0 = arith.constant 0 : i32
    return %arg0, %c0_i32 : i32, i32
  }
  func.func @transform_1(%arg0: i32) -> (i32, i32) {
    %c0_i32 = arith.constant 0 : i32
    %c0_i32_0 = arith.constant 0 : i32
    %c0_i32_1 = arith.constant 0 : i32
    return %c0_i32, %c0_i32_0 : i32, i32
  }
  func.func @transform_2(%arg0: i32) -> (i32, i32) {
    %c0_i32 = arith.constant 0 : i32
    %c0_i32_0 = arith.constant 0 : i32
    %c0_i32_1 = arith.constant 0 : i32
    return %c0_i32, %c0_i32_0 : i32, i32
  }
  func.func @transform_3(%arg0: i32) -> (i32, i32) {
    %c0_i32 = arith.constant 0 : i32
    %c0_i32_0 = arith.constant 0 : i32
    %c0_i32_1 = arith.constant 0 : i32
    return %c0_i32, %c0_i32_0 : i32, i32
  }
  func.func @transform_4(%arg0: i32) -> (i32, i32) {
    %c0_i32 = arith.constant 0 : i32
    %c0_i32_0 = arith.constant 0 : i32
    %c0_i32_1 = arith.constant 0 : i32
    return %c0_i32, %c0_i32_0 : i32, i32
  }
  func.func @transform_5(%arg0: i32) -> (i32, i32) {
    %c0_i32 = arith.constant 0 : i32
    %c0_i32_0 = arith.constant 0 : i32
    %c0_i32_1 = arith.constant 0 : i32
    return %c0_i32, %c0_i32_0 : i32, i32
  }
  func.func @transform_6(%arg0: i32) -> (i32, i32) {
    %c0_i32 = arith.constant 0 : i32
    %c0_i32_0 = arith.constant 0 : i32
    %c0_i32_1 = arith.constant 0 : i32
    return %c0_i32, %c0_i32_0 : i32, i32
  }
  func.func @transform_7(%arg0: i32) -> (i32, i32) {
    %c0_i32 = arith.constant 0 : i32
    %c0_i32_0 = arith.constant 0 : i32
    return %arg0, %c0_i32 : i32, i32
  }
}

</mosaic_0001>

<bundles_post_ra>
// kernel: tpu_custom_call.1
= control target key start
LH: loop header
LB: loop body
LE: loop exit
PB: predicated region body
PF: predicated region fallthrough
CT: control target
= control target key end

     0   :  { %vm143_vm0 = vcmask 1046528   ;;  %vm139_vm1 = vcmask 506880   ;;  %vm206_vm2 = vcmask 1043456   ;;  %vm202_vm3 = vcmask 326656   ;;  %s502_s1 = inlined_call_operand.vmem [shape: bf16[190,40], index: 1, kind: input, shape index: {}]   ;;  %s503_s0 = inlined_call_operand.vmem [shape: bf16[16,190], index: 0, kind: input, shape index: {}]   ;;  %s504_s2 = inlined_call_operand.vmem [shape: f32[1,40], index: 2, kind: input, shape index: {}]   ;;  %s505_s4 = inlined_call_operand.vmem [shape: f32[1,40], index: 4, kind: input, shape index: {}]   ;;  %s506_s3 = inlined_call_operand.vmem [shape: bf16[40,40], index: 3, kind: input, shape index: {}]   ;;  %s507_s5 = inlined_call_operand.vmem [shape: bf16[40,1], index: 5, kind: input, shape index: {}]   ;;  %s508_s6 = inlined_call_operand.<no memory space> [shape: f32[1,1], index: 6, kind: input, shape index: {}]   ;;  %s509_s7 = inlined_call_operand.vmem [shape: f32[16,1], index: 7, kind: output, shape index: {}]  }
   0x1   :  { %v362_v0 = vld [vmem:[%s502_s1 + $0x38] sm:$0xff]  ;;  %v361_v3 = vld [vmem:[%s502_s1 + $0x30] sm:$0xff]  ;;  %v360_v7 = vld [vmem:[%s502_s1 + $0x28] sm:$0xff]  ;;  %v12_v45 = vstv %s508_s6  ;;  %vm271_vm4 = vcmask 7168  }
   0x2   :  { %v332_v1 = vld [vmem:[%s502_s1 + $0x58] sm:$0xf]  ;;  %v366_v2 = vld [vmem:[%s502_s1 + $0x58] sm:$0x70]  ;;  %147 = vmatpush.bf16.msra.mxu0 %v362_v0  ;;  %v365_v6 = vld [vmem:[%s502_s1 + $0x50] sm:$0xff] }
   0x3   :  { %v333_v4 = vor.u32 %v366_v2, %v332_v1  ;;  %v364_v8 = vld [vmem:[%s502_s1 + $0x48] sm:$0xff]  ;;  %v359_v9 = vld [vmem:[%s502_s1 + $0x20] sm:$0xff]  ;;  %v358_v13 = vld [vmem:[%s502_s1 + $0x18] sm:$0xff]  ;;  %13 = vst [vmem:[#allocation2] sm:$0x1] %v12_v45 }
   0x4   :  { %v363_v10 = vld [vmem:[%s502_s1 + $0x40] sm:$0xff]  ;;  %v282_v12 = vld [vmem:[%s503_s0 + $0x8] sm:$0xf0]  ;;  %v357_v15 = vld [vmem:[%s502_s1 + $0x10] sm:$0xff] }
   0x5   :  { %v145_v5 = vsel %vm143_vm0, %v333_v4, 0  ;;  %v353_v11 = vld [vmem:[%s503_s0 + $0x4] sm:$0xf]  ;;  %v356_v16 = vld [vmem:[%s502_s1 + $0x8] sm:$0xff]  ;;  %v280_v18 = vld [vmem:[%s503_s0] sm:$0xf] }
   0x6   :  { %165 = vmatpush.bf16.msra.mxu1 %v145_v5  ;;  %148 = vmatpush.bf16.msra.mxu0 %v361_v3  ;;  %v285_v14 = vor.u32 %v353_v11, %v282_v12  ;;  %v355_v17 = vld [vmem:[%s502_s1] sm:$0xff]  ;;  %v354_v19 = vld [vmem:[%s503_s0 + $0x4] sm:$0xf0]  ;;  %v182_v21 = vld [vmem:[%s506_s3 + $0x10] sm:$0xf] }
   0x7   :  { %v281_v20 = vor.u32 %v354_v19, %v280_v18  ;;  %v196_v22 = vunpack.c.l.b16 %v182_v21  ;;  %v368_v25 = vld [vmem:[%s506_s3 + $0x8] sm:$0xff]  ;;  %v367_v26 = vld [vmem:[%s506_s3] sm:$0xff]  ;;  %v231_v39 = vld [vmem:[%s507_s5 + $0x10] sm:$0xf] }
   0x8   :  { %v371_v29 = vld [vmem:[%s504_s2] ss:$0 sm:$0xff]  ;;  %v245_v40 = vunpack.c.l.b16 %v231_v39  ;;  %v370_v43 = vld [vmem:[%s507_s5 + $0x8] sm:$0xff] }
   0x9   :  { %v199_v23 = vpack.c.b16 %v196_v22, %v196_v22  ;;  %v369_v44 = vld [vmem:[%s507_s5] sm:$0xff] }
   0xa   :  { %166 = vmatpush.bf16.msra.mxu1 %v365_v6  ;;  %149 = vmatpush.bf16.msra.mxu0 %v360_v7  ;;  %v248_v41 = vpack.c.b16 %v245_v40, %v245_v40  ;;  %v372_v47 = vld [vmem:[%s505_s4] ss:$0 sm:$0xff] }
   0xb   :  { %v208_v24 = vsel %vm206_vm2, %v199_v23, 0  ;;  %v373_v54 = vld [vmem:[#allocation2] ss:$0 sm:$0xff] }
   0xc   :  { %215 = vmatpush.bf16.msra.mxu2 %v208_v24  ;;  %v255_v42 = vsel %vm206_vm2, %v248_v41, 0 }
   0xd   :  { %262 = vmatpush.bf16.msra.mxu3 %v255_v42 }
   0xe   :  { %167 = vmatpush.bf16.msra.mxu1 %v364_v8  ;;  %150 = vmatpush.bf16.msra.mxu0 %v359_v9 }
  0x10   :  { %216 = vmatpush.bf16.msra.mxu2 %v368_v25 }
  0x11   :  { %263 = vmatpush.bf16.msra.mxu3 %v370_v43 }
  0x12   :  { %168 = vmatpush.bf16.msra.mxu1 %v363_v10  ;;  %151 = vmatpush.bf16.msra.mxu0 %v358_v13 }
  0x14   :  { %217 = vmatpush.bf16.msra.mxu2 %v367_v26 }
  0x15   :  { %334 = vmatmul.msk.bf16.vlgmr.msra.gmra.mxu1 %vm139_vm1, %v285_v14  ;;  %264 = vmatpush.bf16.msra.mxu3 %v369_v44 }
  0x16   :  { %152 = vmatpush.bf16.msra.mxu0 %v357_v15 }
  0x1a   :  { %153 = vmatpush.bf16.msra.mxu0 %v356_v16 }
  0x1e   :  { %154 = vmatpush.bf16.msra.mxu0 %v355_v17 }
  0x21   :  { %155 = vmatmul.bf16.vlgmr.msra.gmra.mxu0 %v281_v20 }
  0x92   :  { %v170_v27 = vpop.f32.mrf.mxu1 }
  0x9a   :  { %v172_v34 = vpop.f32.mrf.mxu1 }
  0x9e   :  { %v156_v28 = vpop.f32.mrf.mxu0 }
  0x9f   :  { %v157_v30 = vadd.f32 %v371_v29, %v156_v28 }
  0xa1   :  { %v171_v32 = vadd.f32 %v170_v27, %v157_v30 }
  0xa3   :  { %v175_v36 = vmax.f32 %v171_v32, 0.0 }
  0xa6   :  { %v158_v31 = vpop.f32.mrf.mxu0 }
  0xa7   :  { %v159_v33 = vadd.f32 %v371_v29, %v158_v31 }
  0xa9   :  { %v173_v35 = vadd.f32 %v172_v34, %v159_v33 }
  0xab   :  { %v176_v37 = vmax.f32 %v173_v35, 0.0 }
  0xad   :  { %v177_v38 = vpack.c.bf16 %v176_v37, %v175_v36 }
  0xaf   :  { %343 = vmatmul.msk.bf16.vlgmr.msra.gmra.mxu2 %vm202_vm3, %v177_v38 }
 0x132   :  { %v219_v46 = vpop.f32.mrf.mxu2 }
 0x133   :  { %v220_v48 = vadd.f32 %v372_v47, %v219_v46 }
 0x135   :  { %v224_v51 = vmax.f32 %v220_v48, 0.0 }
 0x13a   :  { %v221_v49 = vpop.f32.mrf.mxu2 }
 0x13b   :  { %v222_v50 = vadd.f32 %v372_v47, %v221_v49 }
 0x13d   :  { %v225_v52 = vmax.f32 %v222_v50, 0.0 }
 0x13f   :  { %v226_v53 = vpack.c.bf16 %v225_v52, %v224_v51 }
 0x141   :  { %352 = vmatmul.msk.bf16.vlgmr.msra.gmra.mxu3 %vm202_vm3, %v226_v53 }
 0x1c4   :  { %v266_v55 = vpop.f32.mrf.mxu3 }
 0x1c5   :  { %v267_v56 = vadd.f32 %v373_v54, %v266_v55 }
 0x1c7   :  { %272 = vst.msk [vmem:[%s509_s7] sm:$0xff] %vm271_vm4, %v267_v56 }
 0x1cc   :  { %v268_v57 = vpop.f32.mrf.mxu3 }
 0x1cd   :  { %v269_v58 = vadd.f32 %v373_v54, %v268_v57 }
 0x1cf   :  { %273 = vst.msk [vmem:[%s509_s7 + $0x8] sm:$0xff] %vm271_vm4, %v269_v58 }

</bundles_post_ra>
